<compile_context>
chip_gen: v7x
topology: tpu7x:2x2x1
jax: 0.10.0
libtpu: 0.0.40
codegen_flags: <defaults>
</compile_context>

<pallas_src>
import jax
import jax.numpy as jnp
from jax.experimental import pallas as pl
from jax.experimental.pallas import tpu as pltpu

EPS = 1e-7
LANE = 128
NEG_INF = -1e30


def _vmem_spec():
    return pl.BlockSpec(memory_space=pltpu.MemorySpace.VMEM)


def _round_up(n, m=LANE):
    return ((n + m - 1) // m) * m


def _pad2(a, rows, cols):
    return jnp.pad(a, ((0, rows - a.shape[0]), (0, cols - a.shape[1])))


# --------------------------- fused forward kernel ---------------------------
def _make_fused_kernel(layer_flags, n_layer_params):
    """Fully-fused forward kernel, specialized at trace time on per-layer structure
    (layers with cin == cout have no lin_src / lin_dst)."""

    def kernel(*refs):
        x_ref, adj_ref, pool_ref, mask_ref = refs[0], refs[1], refs[2], refs[3]
        p = refs[4:4 + n_layer_params]
        wfc_ref, bfc_ref = refs[4 + n_layer_params], refs[5 + n_layer_params]
        o_ref = refs[6 + n_layer_params]

        x = x_ref[...]          # f32 activations, lane-padded to 128
        adj = adj_ref[...]      # bf16 edge multiplicities (exact small integers)

        idx = 0
        for has_lin in layer_flags:         # Python-unrolled: shapes static per layer
            if has_lin:
                w_src, b_src = p[idx][...], p[idx + 1][...]
                idx += 2
                s = jnp.dot(x.astype(jnp.bfloat16), w_src,
                            preferred_element_type=jnp.float32) + b_src
            else:
                s = x                        # lin_src omitted when cin == cout
            # message: relu(x_j) + EPS (EPS per incoming edge via the adjacency matmul)
            msg = jnp.maximum(s, 0.0) + EPS
            agg = jnp.dot(adj, msg.astype(jnp.bfloat16),
                          preferred_element_type=jnp.float32)          # aggr='add'

            w_mlp = p[idx][...]
            idx += 1
            if has_lin:
                # host-folded dst path:
                #   (agg + x@w_dst + b_dst)@w_mlp + b_mlp
                #     == agg@w_mlp + x@(w_dst@w_mlp) + (b_dst@w_mlp + b_mlp)
                w_fold, b_fold = p[idx][...], p[idx + 1][...]
                idx += 2
                x = (jnp.dot(agg.astype(jnp.bfloat16), w_mlp,
                             preferred_element_type=jnp.float32)
                     + jnp.dot(x.astype(jnp.bfloat16), w_fold,
                               preferred_element_type=jnp.float32)
                     + b_fold)
            else:
                b_mlp = p[idx][...]
                idx += 1
                x = jnp.dot((agg + x).astype(jnp.bfloat16), w_mlp,
                            preferred_element_type=jnp.float32) + b_mlp

        # head: global_mean_pool -> fc1 -> log_softmax.  Tiny (G rows), keep f32.
        pooled = jnp.dot(pool_ref[...], x, preferred_element_type=jnp.float32)
        y = jnp.dot(pooled, wfc_ref[...], preferred_element_type=jnp.float32) + bfc_ref[...]
        y = y + mask_ref[...]                      # padded lanes -> -1e30 (exp -> 0)
        m = jnp.max(y, axis=1, keepdims=True)
        z = y - m
        lse = jnp.log(jnp.sum(jnp.exp(z), axis=1, keepdims=True))
        o_ref[...] = (z - lse).astype(o_ref.dtype)

    return kernel


def gnn_forward_fused(x_p, adj_bf16, pool_mat, head_mask,
                      conv_params_p, w_fc_p, b_fc_p, out_dim):
    """Single pallas_call, no grid: all operands (a few hundred KiB at these sizes)
    stay resident in VMEM for the whole pass."""
    flags = tuple(bool(prm["has_lin"]) for prm in conv_params_p)
    flat = []
    for prm in conv_params_p:
        if prm["has_lin"]:
            flat += [prm["w_src"], prm["b_src"], prm["w_mlp"], prm["w_fold"], prm["b_fold"]]
        else:
            flat += [prm["w_mlp"], prm["b_mlp"]]
    n_layer_params = len(flat)
    kernel = _make_fused_kernel(flags, n_layer_params)
    n_in = 4 + n_layer_params + 2
    g = pool_mat.shape[0]
    out_p = w_fc_p.shape[1]
    out_full = pl.pallas_call(
        kernel,
        out_shape=jax.ShapeDtypeStruct((g, out_p), jnp.float32),   # lane-dense [G,128]
        in_specs=[_vmem_spec() for _ in range(n_in)],
        out_specs=_vmem_spec(),
    )(x_p, adj_bf16, pool_mat, head_mask, *flat, w_fc_p, b_fc_p)
    return out_full[:, :out_dim]                                   # slice padding on host


# ------------------- tiled adjacency aggregation (realistic N) ---------------
def _agg_kernel(adj_ref, msg_ref, out_ref, acc_ref):
    @pl.when(pl.program_id(1) == 0)
    def _():
        acc_ref[...] = jnp.zeros_like(acc_ref)
    acc_ref[...] += jnp.dot(adj_ref[...], msg_ref[...],
                            preferred_element_type=jnp.float32)
    @pl.when(pl.program_id(1) == pl.num_programs(1) - 1)
    def _():
        out_ref[...] = acc_ref[...]


def aggregate_tiled(adj_bf16, msg_bf16, *, t_dst=512, t_src=512):
    """agg = A @ msg with A streamed from HBM in (t_dst, t_src) bf16 tiles.

    grid = (dst_tiles, src_tiles); dst axis "parallel" (2 TCs on v7x), src
    (reduction) axis last / "arbitrary"; f32 VMEM accumulator per dst tile.
    Defaults sized for v7x's 64 MiB VMEM; raise to 1024-2048 on v5e/v6e and (v5e)
    consider pipeline_mode=pl.Buffered(3) on the adj spec to hide its lower HBM BW.
    """
    n_dst, n_src = adj_bf16.shape
    c = msg_bf16.shape[1]
    t_dst = min(t_dst, n_dst)
    t_src = min(t_src, n_src)
    assert n_dst % t_dst == 0 and n_src % t_src == 0
    return pl.pallas_call(
        _agg_kernel,
        out_shape=jax.ShapeDtypeStruct((n_dst, c), jnp.float32),
        grid_spec=pltpu.PrefetchScalarGridSpec(
            num_scalar_prefetch=0,
            grid=(n_dst // t_dst, n_src // t_src),
            in_specs=[pl.BlockSpec((t_dst, t_src), lambda i, k: (i, k)),
                      pl.BlockSpec((t_src, c), lambda i, k: (k, 0))],
            out_specs=pl.BlockSpec((t_dst, c), lambda i, k: (i, 0)),
            scratch_shapes=[pltpu.VMEM((t_dst, c), jnp.float32)]),
        compiler_params=pltpu.CompilerParams(
            dimension_semantics=("parallel", "arbitrary")),
    )(adj_bf16, msg_bf16)


# ------------------------------- parameters --------------------------------
def _linear_params(key, cin, cout, scale=0.1):
    kw, kb = jax.random.split(key)
    w = scale * jax.random.normal(kw, (cin, cout), jnp.float32)
    b = scale * jax.random.normal(kb, (1, cout), jnp.float32)
    return w, b


def init_conv_params(key, cin, cout):
    """Real (unpadded) parameters of one GCNConv layer + its MLP."""
    if cin == cout:
        # lin_src / lin_dst omitted when in_channels == out_channels -> identity path.
        w_mlp, b_mlp = _linear_params(key, cout, cout)
        return dict(has_lin=False, w_mlp=w_mlp, b_mlp=b_mlp)
    k1, k2, k3 = jax.random.split(key, 3)
    w_src, b_src = _linear_params(k1, cin, cout)
    w_dst, b_dst = _linear_params(k2, cin, cout)
    w_mlp, b_mlp = _linear_params(k3, cout, cout)
    return dict(has_lin=True, w_src=w_src, b_src=b_src, w_dst=w_dst, b_dst=b_dst,
                w_mlp=w_mlp, b_mlp=b_mlp)


def prepare_kernel_params(conv_params):
    """Pad every channel dim to a multiple of 128 lanes (zero rows AND columns),
    fold lin_dst into the MLP, and cast weight matrices to bf16 (biases stay f32)."""
    out = []
    for prm in conv_params:
        if prm["has_lin"]:
            cin, cout = prm["w_src"].shape
            cin_p, cout_p = _round_up(cin), _round_up(cout)
            w_src = _pad2(prm["w_src"], cin_p, cout_p)
            b_src = _pad2(prm["b_src"], 1, cout_p)
            w_dst = _pad2(prm["w_dst"], cin_p, cout_p)
            b_dst = _pad2(prm["b_dst"], 1, cout_p)
            w_mlp = _pad2(prm["w_mlp"], cout_p, cout_p)
            b_mlp = _pad2(prm["b_mlp"], 1, cout_p)
            w_fold = w_dst @ w_mlp                    # one-time host-side fold, f32
            b_fold = b_dst @ w_mlp + b_mlp
            out.append(dict(has_lin=True,
                            w_src=w_src.astype(jnp.bfloat16), b_src=b_src,
                            w_mlp=w_mlp.astype(jnp.bfloat16),
                            w_fold=w_fold.astype(jnp.bfloat16), b_fold=b_fold))
        else:
            c = prm["w_mlp"].shape[0]
            c_p = _round_up(c)
            out.append(dict(has_lin=False,
                            w_mlp=_pad2(prm["w_mlp"], c_p, c_p).astype(jnp.bfloat16),
                            b_mlp=_pad2(prm["b_mlp"], 1, c_p)))
    return out


# ----------------------------- pure-JAX reference ----------------------------
def reference_forward(x, adj, pool_mat, conv_params, w_fc, b_fc):
    h = x
    for prm in conv_params:
        if prm["has_lin"]:
            s = h @ prm["w_src"] + prm["b_src"]
            d = h @ prm["w_dst"] + prm["b_dst"]
        else:
            s, d = h, h
        msg = jnp.maximum(s, 0.0) + EPS
        agg = adj @ msg
        h = (agg + d) @ prm["w_mlp"] + prm["b_mlp"]
    pooled = pool_mat @ h
    y = pooled @ w_fc + b_fc
    return jax.nn.log_softmax(y, axis=1)


# ---------------------------------- main ------------------------------------
if __name__ == "__main__":
    # model config (small, consistent with the module's __init__)
    input_features = 8
    model_dim = 32
    hidden_sf = 3
    out_sf = 2
    output_channels = 4
    out_dim = 8
    layers_num = 3
    hidden = hidden_sf * model_dim          # 96
    out_conv = out_sf * output_channels     # 8

    # graph: 2 ring graphs of 8 nodes each
    num_graphs = 2
    nodes_per_graph = 8
    N = num_graphs * nodes_per_graph
    src, dst = [], []
    for g in range(num_graphs):
        o = g * nodes_per_graph
        for i in range(nodes_per_graph):
            j = (i + 1) % nodes_per_graph
            src += [o + i, o + j]
            dst += [o + j, o + i]
    edge_index = jnp.array([src, dst], dtype=jnp.int32)               # [2, E]
    batch = jnp.repeat(jnp.arange(num_graphs, dtype=jnp.int32), nodes_per_graph)

    # dense adjacency (A[dst, src] = multiplicity) and mean-pool matrix (host-side glue)
    adj = jnp.zeros((N, N), jnp.float32).at[edge_index[1], edge_index[0]].add(1.0)
    counts = jnp.zeros((num_graphs,), jnp.float32).at[batch].add(1.0)
    pool_mat = jax.nn.one_hot(batch, num_graphs, dtype=jnp.float32).T / counts[:, None]

    # deterministic parameters (real, unpadded)
    root = jax.random.PRNGKey(0)
    kx, kfc, kchk, *klayers = jax.random.split(root, 3 + layers_num)
    x = jax.random.normal(kx, (N, input_features), jnp.float32)

    layer_dims = [(input_features, hidden)] \
               + [(hidden, hidden)] * (layers_num - 2) \
               + [(hidden, out_conv)]
    conv_params = [init_conv_params(k, cin, cout)
                   for k, (cin, cout) in zip(klayers, layer_dims)]
    w_fc, b_fc = _linear_params(kfc, out_conv, out_dim)

    # host-side padding / folding / dtype prep (lane-dense layout, bf16 MXU operands)
    in_p = _round_up(input_features)
    out_conv_p = _round_up(out_conv)
    out_dim_p = _round_up(out_dim)
    x_p = _pad2(x, N, in_p)
    adj_bf16 = adj.astype(jnp.bfloat16)            # multiplicities <= 256 -> exact
    conv_params_p = prepare_kernel_params(conv_params)
    w_fc_p = _pad2(w_fc, out_conv_p, out_dim_p)
    b_fc_p = _pad2(b_fc, 1, out_dim_p)
    head_mask = jnp.where(jnp.arange(out_dim_p)[None, :] < out_dim,
                          0.0, NEG_INF).astype(jnp.float32)

    # fused forward (single kernel launch)
    out = gnn_forward_fused(x_p, adj_bf16, pool_mat, head_mask,
                            conv_params_p, w_fc_p, b_fc_p, out_dim)
    out = jax.block_until_ready(out)
    assert out.shape == (num_graphs, out_dim)

    # correctness vs pure-JAX f32 reference (loose tolerance: bf16 MXU operands)
    ref = reference_forward(x, adj, pool_mat, conv_params, w_fc, b_fc)
    assert bool(jnp.allclose(out, ref, atol=1e-1, rtol=0.0)), (out, ref)

    # tiled aggregation kernel (the realistic-N path) exercised on a 2x2 grid
    n_chk, c_chk, t_chk = 256, 128, 128
    ka, km = jax.random.split(kchk)
    adj_chk = (jax.random.uniform(ka, (n_chk, n_chk)) < 0.05).astype(jnp.bfloat16)
    msg_chk = jax.random.normal(km, (n_chk, c_chk), jnp.float32).astype(jnp.bfloat16)
    agg_tiled = jax.block_until_ready(
        aggregate_tiled(adj_chk, msg_chk, t_dst=t_chk, t_src=t_chk))
    agg_ref = jnp.dot(adj_chk.astype(jnp.float32), msg_chk.astype(jnp.float32))
    assert bool(jnp.allclose(agg_tiled, agg_ref, atol=1e-2, rtol=1e-2))

    print("KERNEL_OK")
</pallas_src>

<mosaic_0001>
module attributes {stable_mosaic.version = 11 : i64} {
  func.func @kernel(%arg0: memref<16x128xf32, #tpu.memory_space<vmem>>, %arg1: memref<16x16xbf16, #tpu.memory_space<vmem>>, %arg2: memref<2x16xf32, #tpu.memory_space<vmem>>, %arg3: memref<1x128xf32, #tpu.memory_space<vmem>>, %arg4: memref<128x128xbf16, #tpu.memory_space<vmem>>, %arg5: memref<1x128xf32, #tpu.memory_space<vmem>>, %arg6: memref<128x128xbf16, #tpu.memory_space<vmem>>, %arg7: memref<128x128xbf16, #tpu.memory_space<vmem>>, %arg8: memref<1x128xf32, #tpu.memory_space<vmem>>, %arg9: memref<128x128xbf16, #tpu.memory_space<vmem>>, %arg10: memref<1x128xf32, #tpu.memory_space<vmem>>, %arg11: memref<128x128xbf16, #tpu.memory_space<vmem>>, %arg12: memref<1x128xf32, #tpu.memory_space<vmem>>, %arg13: memref<128x128xbf16, #tpu.memory_space<vmem>>, %arg14: memref<128x128xbf16, #tpu.memory_space<vmem>>, %arg15: memref<1x128xf32, #tpu.memory_space<vmem>>, %arg16: memref<128x128xf32, #tpu.memory_space<vmem>>, %arg17: memref<1x128xf32, #tpu.memory_space<vmem>>, %arg18: memref<2x128xf32, #tpu.memory_space<vmem>>) attributes {dimension_semantics = [], scalar_prefetch = 0 : i64, scratch_operands = 0 : i64, tpu.core_type = #tpu.core_type<tc>} {
    %c0 = arith.constant 0 : index
    %c0_0 = arith.constant 0 : index
    %0 = vector.load %arg0[%c0, %c0_0] : memref<16x128xf32, #tpu.memory_space<vmem>>, vector<16x128xf32>
    %c0_1 = arith.constant 0 : index
    %c0_2 = arith.constant 0 : index
    %1 = vector.load %arg1[%c0_1, %c0_2] : memref<16x16xbf16, #tpu.memory_space<vmem>>, vector<16x16xbf16>
    %c0_3 = arith.constant 0 : index
    %c0_4 = arith.constant 0 : index
    %2 = vector.load %arg4[%c0_3, %c0_4] : memref<128x128xbf16, #tpu.memory_space<vmem>>, vector<128x128xbf16>
    %c0_5 = arith.constant 0 : index
    %c0_6 = arith.constant 0 : index
    %3 = vector.load %arg5[%c0_5, %c0_6] : memref<1x128xf32, #tpu.memory_space<vmem>>, vector<1x128xf32>
    %4 = arith.truncf %0 : vector<16x128xf32> to vector<16x128xbf16>
    %cst = arith.constant dense<0.000000e+00> : vector<16x128xf32>
    %5 = tpu.matmul %4, %2, %cst {dimension_numbers = #tpu.dot_dimension_numbers<[1], [0], [0], [1], [0, 0, 1, 1], [], []>} : vector<16x128xbf16>, vector<128x128xbf16>, vector<16x128xf32> -> vector<16x128xf32>
    %6 = vector.broadcast %3 : vector<1x128xf32> to vector<16x128xf32>
    %7 = arith.addf %5, %6 : vector<16x128xf32>
    %cst_7 = arith.constant 0.000000e+00 : f32
    %8 = vector.broadcast %cst_7 : f32 to vector<16x128xf32>
    %9 = arith.maximumf %7, %8 : vector<16x128xf32>
    %cst_8 = arith.constant 1.000000e-07 : f32
    %10 = vector.broadcast %cst_8 : f32 to vector<16x128xf32>
    %11 = arith.addf %9, %10 : vector<16x128xf32>
    %12 = arith.truncf %11 : vector<16x128xf32> to vector<16x128xbf16>
    %cst_9 = arith.constant dense<0.000000e+00> : vector<16x128xf32>
    %13 = tpu.matmul %1, %12, %cst_9 {dimension_numbers = #tpu.dot_dimension_numbers<[1], [0], [0], [1], [0, 0, 1, 1], [], []>} : vector<16x16xbf16>, vector<16x128xbf16>, vector<16x128xf32> -> vector<16x128xf32>
    %c0_10 = arith.constant 0 : index
    %c0_11 = arith.constant 0 : index
    %14 = vector.load %arg6[%c0_10, %c0_11] : memref<128x128xbf16, #tpu.memory_space<vmem>>, vector<128x128xbf16>
    %c0_12 = arith.constant 0 : index
    %c0_13 = arith.constant 0 : index
    %15 = vector.load %arg7[%c0_12, %c0_13] : memref<128x128xbf16, #tpu.memory_space<vmem>>, vector<128x128xbf16>
    %c0_14 = arith.constant 0 : index
    %c0_15 = arith.constant 0 : index
    %16 = vector.load %arg8[%c0_14, %c0_15] : memref<1x128xf32, #tpu.memory_space<vmem>>, vector<1x128xf32>
    %17 = arith.truncf %13 : vector<16x128xf32> to vector<16x128xbf16>
    %cst_16 = arith.constant dense<0.000000e+00> : vector<16x128xf32>
    %18 = tpu.matmul %17, %14, %cst_16 {dimension_numbers = #tpu.dot_dimension_numbers<[1], [0], [0], [1], [0, 0, 1, 1], [], []>} : vector<16x128xbf16>, vector<128x128xbf16>, vector<16x128xf32> -> vector<16x128xf32>
    %19 = arith.truncf %0 : vector<16x128xf32> to vector<16x128xbf16>
    %cst_17 = arith.constant dense<0.000000e+00> : vector<16x128xf32>
    %20 = tpu.matmul %19, %15, %cst_17 {dimension_numbers = #tpu.dot_dimension_numbers<[1], [0], [0], [1], [0, 0, 1, 1], [], []>} : vector<16x128xbf16>, vector<128x128xbf16>, vector<16x128xf32> -> vector<16x128xf32>
    %21 = arith.addf %18, %20 : vector<16x128xf32>
    %22 = vector.broadcast %16 : vector<1x128xf32> to vector<16x128xf32>
    %23 = arith.addf %21, %22 : vector<16x128xf32>
    %cst_18 = arith.constant 0.000000e+00 : f32
    %24 = vector.broadcast %cst_18 : f32 to vector<16x128xf32>
    %25 = arith.maximumf %23, %24 : vector<16x128xf32>
    %cst_19 = arith.constant 1.000000e-07 : f32
    %26 = vector.broadcast %cst_19 : f32 to vector<16x128xf32>
    %27 = arith.addf %25, %26 : vector<16x128xf32>
    %28 = arith.truncf %27 : vector<16x128xf32> to vector<16x128xbf16>
    %cst_20 = arith.constant dense<0.000000e+00> : vector<16x128xf32>
    %29 = tpu.matmul %1, %28, %cst_20 {dimension_numbers = #tpu.dot_dimension_numbers<[1], [0], [0], [1], [0, 0, 1, 1], [], []>} : vector<16x16xbf16>, vector<16x128xbf16>, vector<16x128xf32> -> vector<16x128xf32>
    %c0_21 = arith.constant 0 : index
    %c0_22 = arith.constant 0 : index
    %30 = vector.load %arg9[%c0_21, %c0_22] : memref<128x128xbf16, #tpu.memory_space<vmem>>, vector<128x128xbf16>
    %c0_23 = arith.constant 0 : index
    %c0_24 = arith.constant 0 : index
    %31 = vector.load %arg10[%c0_23, %c0_24] : memref<1x128xf32, #tpu.memory_space<vmem>>, vector<1x128xf32>
    %32 = arith.addf %29, %23 : vector<16x128xf32>
    %33 = arith.truncf %32 : vector<16x128xf32> to vector<16x128xbf16>
    %cst_25 = arith.constant dense<0.000000e+00> : vector<16x128xf32>
    %34 = tpu.matmul %33, %30, %cst_25 {dimension_numbers = #tpu.dot_dimension_numbers<[1], [0], [0], [1], [0, 0, 1, 1], [], []>} : vector<16x128xbf16>, vector<128x128xbf16>, vector<16x128xf32> -> vector<16x128xf32>
    %35 = vector.broadcast %31 : vector<1x128xf32> to vector<16x128xf32>
    %36 = arith.addf %34, %35 : vector<16x128xf32>
    %c0_26 = arith.constant 0 : index
    %c0_27 = arith.constant 0 : index
    %37 = vector.load %arg11[%c0_26, %c0_27] : memref<128x128xbf16, #tpu.memory_space<vmem>>, vector<128x128xbf16>
    %c0_28 = arith.constant 0 : index
    %c0_29 = arith.constant 0 : index
    %38 = vector.load %arg12[%c0_28, %c0_29] : memref<1x128xf32, #tpu.memory_space<vmem>>, vector<1x128xf32>
    %39 = arith.truncf %36 : vector<16x128xf32> to vector<16x128xbf16>
    %cst_30 = arith.constant dense<0.000000e+00> : vector<16x128xf32>
    %40 = tpu.matmul %39, %37, %cst_30 {dimension_numbers = #tpu.dot_dimension_numbers<[1], [0], [0], [1], [0, 0, 1, 1], [], []>} : vector<16x128xbf16>, vector<128x128xbf16>, vector<16x128xf32> -> vector<16x128xf32>
    %41 = vector.broadcast %38 : vector<1x128xf32> to vector<16x128xf32>
    %42 = arith.addf %40, %41 : vector<16x128xf32>
    %cst_31 = arith.constant 0.000000e+00 : f32
    %43 = vector.broadcast %cst_31 : f32 to vector<16x128xf32>
    %44 = arith.maximumf %42, %43 : vector<16x128xf32>
    %cst_32 = arith.constant 1.000000e-07 : f32
    %45 = vector.broadcast %cst_32 : f32 to vector<16x128xf32>
    %46 = arith.addf %44, %45 : vector<16x128xf32>
    %47 = arith.truncf %46 : vector<16x128xf32> to vector<16x128xbf16>
    %cst_33 = arith.constant dense<0.000000e+00> : vector<16x128xf32>
    %48 = tpu.matmul %1, %47, %cst_33 {dimension_numbers = #tpu.dot_dimension_numbers<[1], [0], [0], [1], [0, 0, 1, 1], [], []>} : vector<16x16xbf16>, vector<16x128xbf16>, vector<16x128xf32> -> vector<16x128xf32>
    %c0_34 = arith.constant 0 : index
    %c0_35 = arith.constant 0 : index
    %49 = vector.load %arg13[%c0_34, %c0_35] : memref<128x128xbf16, #tpu.memory_space<vmem>>, vector<128x128xbf16>
    %c0_36 = arith.constant 0 : index
    %c0_37 = arith.constant 0 : index
    %50 = vector.load %arg14[%c0_36, %c0_37] : memref<128x128xbf16, #tpu.memory_space<vmem>>, vector<128x128xbf16>
    %c0_38 = arith.constant 0 : index
    %c0_39 = arith.constant 0 : index
    %51 = vector.load %arg15[%c0_38, %c0_39] : memref<1x128xf32, #tpu.memory_space<vmem>>, vector<1x128xf32>
    %52 = arith.truncf %48 : vector<16x128xf32> to vector<16x128xbf16>
    %cst_40 = arith.constant dense<0.000000e+00> : vector<16x128xf32>
    %53 = tpu.matmul %52, %49, %cst_40 {dimension_numbers = #tpu.dot_dimension_numbers<[1], [0], [0], [1], [0, 0, 1, 1], [], []>} : vector<16x128xbf16>, vector<128x128xbf16>, vector<16x128xf32> -> vector<16x128xf32>
    %54 = arith.truncf %36 : vector<16x128xf32> to vector<16x128xbf16>
    %cst_41 = arith.constant dense<0.000000e+00> : vector<16x128xf32>
    %55 = tpu.matmul %54, %50, %cst_41 {dimension_numbers = #tpu.dot_dimension_numbers<[1], [0], [0], [1], [0, 0, 1, 1], [], []>} : vector<16x128xbf16>, vector<128x128xbf16>, vector<16x128xf32> -> vector<16x128xf32>
    %56 = arith.addf %53, %55 : vector<16x128xf32>
    %57 = vector.broadcast %51 : vector<1x128xf32> to vector<16x128xf32>
    %58 = arith.addf %56, %57 : vector<16x128xf32>
    %c0_42 = arith.constant 0 : index
    %c0_43 = arith.constant 0 : index
    %59 = vector.load %arg2[%c0_42, %c0_43] : memref<2x16xf32, #tpu.memory_space<vmem>>, vector<2x16xf32>
    %cst_44 = arith.constant dense<0.000000e+00> : vector<2x128xf32>
    %60 = tpu.matmul %59, %58, %cst_44 {dimension_numbers = #tpu.dot_dimension_numbers<[1], [0], [0], [1], [0, 0, 1, 1], [], []>} : vector<2x16xf32>, vector<16x128xf32>, vector<2x128xf32> -> vector<2x128xf32>
    %c0_45 = arith.constant 0 : index
    %c0_46 = arith.constant 0 : index
    %61 = vector.load %arg16[%c0_45, %c0_46] : memref<128x128xf32, #tpu.memory_space<vmem>>, vector<128x128xf32>
    %cst_47 = arith.constant dense<0.000000e+00> : vector<2x128xf32>
    %62 = tpu.matmul %60, %61, %cst_47 {dimension_numbers = #tpu.dot_dimension_numbers<[1], [0], [0], [1], [0, 0, 1, 1], [], []>} : vector<2x128xf32>, vector<128x128xf32>, vector<2x128xf32> -> vector<2x128xf32>
    %c0_48 = arith.constant 0 : index
    %c0_49 = arith.constant 0 : index
    %63 = vector.load %arg17[%c0_48, %c0_49] : memref<1x128xf32, #tpu.memory_space<vmem>>, vector<1x128xf32>
    %64 = vector.broadcast %63 : vector<1x128xf32> to vector<2x128xf32>
    %65 = arith.addf %62, %64 : vector<2x128xf32>
    %c0_50 = arith.constant 0 : index
    %c0_51 = arith.constant 0 : index
    %66 = vector.load %arg3[%c0_50, %c0_51] : memref<1x128xf32, #tpu.memory_space<vmem>>, vector<1x128xf32>
    %67 = vector.broadcast %66 : vector<1x128xf32> to vector<2x128xf32>
    %68 = arith.addf %65, %67 : vector<2x128xf32>
    %cst_52 = arith.constant dense<0xFF800000> : vector<2xf32>
    %69 = vector.multi_reduction <maximumf>, %68, %cst_52 [1] : vector<2x128xf32> to vector<2xf32>
    %70 = vector.shape_cast %69 : vector<2xf32> to vector<2x1xf32>
    %71 = vector.broadcast %70 : vector<2x1xf32> to vector<2x128xf32>
    %72 = arith.subf %68, %71 : vector<2x128xf32>
    %73 = math.exp %72 : vector<2x128xf32>
    %cst_53 = arith.constant dense<0.000000e+00> : vector<2xf32>
    %74 = vector.multi_reduction <add>, %73, %cst_53 [1] : vector<2x128xf32> to vector<2xf32>
    %75 = vector.shape_cast %74 : vector<2xf32> to vector<2x1xf32>
    %76 = math.log %75 : vector<2x1xf32>
    %77 = vector.broadcast %76 : vector<2x1xf32> to vector<2x128xf32>
    %78 = arith.subf %72, %77 : vector<2x128xf32>
    %c0_54 = arith.constant 0 : index
    %c0_55 = arith.constant 0 : index
    %79 = vector.load %arg18[%c0_54, %c0_55] : memref<2x128xf32, #tpu.memory_space<vmem>>, vector<2x128xf32>
    tpu.vector_store %arg18[%c0_54, %c0_55], %78 {strides = array<i32>} : memref<2x128xf32, #tpu.memory_space<vmem>>, vector<2x128xf32>,
    return
  }
}

</mosaic_0001>

<bundles_post_ra>
// kernel: tpu_custom_call.1
= control target key start
LH: loop header
LB: loop body
LE: loop exit
PB: predicated region body
PF: predicated region fallthrough
CT: control target
= control target key end

     0   :  { %s2450_s0 = inlined_call_operand.hbm [shape: f32[16,128], index: 0, kind: input, shape index: {}]   ;;  %s2451_s1 = inlined_call_operand.hbm [shape: bf16[16,16], index: 1, kind: input, shape index: {}]   ;;  %s2452_s2 = inlined_call_operand.vmem [shape: f32[2,16], index: 2, kind: input, shape index: {}]   ;;  %s2453_s3 = inlined_call_operand.vmem [shape: f32[1,128], index: 3, kind: input, shape index: {}]   ;;  %s2454_s4 = inlined_call_operand.hbm [shape: bf16[128,128], index: 4, kind: input, shape index: {}]   ;;  %s2455_s5 = inlined_call_operand.vmem [shape: f32[1,128], index: 5, kind: input, shape index: {}]   ;;  %s2456_s6 = inlined_call_operand.hbm [shape: bf16[128,128], index: 6, kind: input, shape index: {}]   ;;  %s2457_s7 = inlined_call_operand.hbm [shape: bf16[128,128], index: 7, kind: input, shape index: {}]   ;;  %s2458_s8 = inlined_call_operand.vmem [shape: f32[1,128], index: 8, kind: input, shape index: {}]   ;;  %s2459_s9 = inlined_call_operand.hbm [shape: bf16[128,128], index: 9, kind: input, shape index: {}]   ;;  %s2460_s10 = inlined_call_operand.vmem [shape: f32[1,128], index: 10, kind: input, shape index: {}]   ;;  %s2461_s11 = inlined_call_operand.hbm [shape: bf16[128,128], index: 11, kind: input, shape index: {}]   ;;  %s2462_s12 = inlined_call_operand.vmem [shape: f32[1,128], index: 12, kind: input, shape index: {}]   ;;  %s2463_s13 = inlined_call_operand.hbm [shape: bf16[128,128], index: 13, kind: input, shape index: {}]   ;;  %s2464_s14 = inlined_call_operand.hbm [shape: bf16[128,128], index: 14, kind: input, shape index: {}]   ;;  %s2465_s15 = inlined_call_operand.vmem [shape: f32[1,128], index: 15, kind: input, shape index: {}]   ;;  %s2466_s16 = inlined_call_operand.hbm [shape: f32[128,128], index: 16, kind: input, shape index: {}]   ;;  %s2467_s17 = inlined_call_operand.vmem [shape: f32[1,128], index: 17, kind: input, shape index: {}]   ;;  %s2468_s18 = inlined_call_operand.hbm [shape: f32[2,128], index: 18, kind: output, shape index: {}]  }
   0x1   :  { %2472 = sst [smem:[#allocation27_spill]] %s2450_s0 }
   0x2   :  { %2473 = sst [smem:[#allocation28_spill]] %s2451_s1 }
   0x3   :  { %2474 = sst [smem:[#allocation29_spill]] %s2452_s2 }
   0x4   :  { %2475 = sst [smem:[#allocation30_spill]] %s2453_s3 }
   0x5   :  { %2476 = sst [smem:[#allocation31_spill]] %s2468_s18 }
   0x6   :  { %23 = vsyncpa [#allocation3], 0 }
   0x7   :  { %24 = vsyncpa [#allocation6], 0 }
   0x8   :  { %25 = vsyncpa [#allocation9], 0 }
   0x9   :  { %26 = vsyncpa [#allocation12], 0 }
   0xa   :  { %27 = vsyncpa [#allocation15], 0 }
   0xb   :  { %28 = vsyncpa [#allocation18], 0 }
   0xc   :  { %29 = vsyncpa [#allocation4], 0  ;;  %s2055_s27 = smov [#allocation5]   ;;  %s2477_s0 = sld [smem:[#allocation28_spill]] }
   0xd   :  { %s47_s28 = sshll.u32 %s2055_s27, 4  ;;  %s48_s28 = int_to_ptr.vmem [resolvable:$true] %s47_s28 }
  0x12   :  { %s1799_s19 = scalar_lea.hbm %s2477_s0, 128 }
  0x13   :  { %p1800_p0 = scmp.ne.s32.totalorder %s2477_s0, %s1799_s19  ;;  %p1803_p1 = scmp.lt.u32.totalorder %s1799_s19, %s2477_s0 }
  0x15   :  { %p1805_p2 = pnand %p1803_p1, %p1800_p0 }
  0x17   :  { %1808 = shalt.err (!%p1805_p2)
}
  0x18   :  { %s1809_s2 = scalar_lea.vmem %s48_s28, 128  ;;  %p1814_p4 = scmp.lt.s32.totalorder %s48_s28, %s48_s28 }
  0x19   :  { %p1810_p3 = scmp.ne.s32.totalorder %s48_s28, %s1809_s2  ;;  %p1815_p5 = scmp.lt.s32.totalorder %s1809_s2, %s1809_s2 }
  0x1b   :  { %p1816_p6 = por %p1815_p5, %p1814_p4 }
  0x1d   :  { %p1817_p7 = pnand %p1816_p6, %p1810_p3 }
  0x1f   :  { %1820 = shalt.err (!%p1817_p7)
}
  0x20   :  { %s2056_s23 = smov 64   ;;  %s2057_s24 = smov 4  }
  0x21   :  { %53 = dma.hbm_to_vmem [thread:$0]  %s2477_s0, 128, %s48_s28, [#allocation6], %s2056_s23, %s2056_s23, %s2057_s24  }
  0x22   :  { %s2058_s27 = smov [#allocation8]   ;;  %s2059_s30 = smov [#allocation11]  }
  0x23   :  { %s77_s29 = sshll.u32 %s2058_s27, 4  ;;  %s103_s19 = sshll.u32 %s2059_s30, 4  ;;  %s78_s29 = int_to_ptr.vmem [resolvable:$true] %s77_s29  ;;  %s104_s19 = int_to_ptr.vmem [resolvable:$true] %s103_s19 }
  0x24   :  { %s1821_s21 = scalar_lea.hbm %s2456_s6, 1024 }
  0x25   :  { %p1822_p8 = scmp.ne.s32.totalorder %s2456_s6, %s1821_s21  ;;  %p1825_p9 = scmp.lt.u32.totalorder %s1821_s21, %s2456_s6 }
  0x27   :  { %p1827_p10 = pnand %p1825_p9, %p1822_p8 }
  0x29   :  { %1830 = shalt.err (!%p1827_p10)
}
  0x2a   :  { %s1831_s28 = scalar_lea.vmem %s78_s29, 1024  ;;  %p1836_p12 = scmp.lt.s32.totalorder %s78_s29, %s78_s29 }
  0x2b   :  { %p1832_p11 = scmp.ne.s32.totalorder %s78_s29, %s1831_s28  ;;  %p1837_p13 = scmp.lt.s32.totalorder %s1831_s28, %s1831_s28 }
  0x2d   :  { %p1838_p0 = por %p1837_p13, %p1836_p12 }
  0x2f   :  { %p1839_p1 = pnand %p1838_p0, %p1832_p11 }
  0x31   :  { %1842 = shalt.err (!%p1839_p1)
}
  0x32   :  { %83 = dma.hbm_to_vmem [thread:$0]  %s2456_s6, 1024, %s78_s29, [#allocation9], %s2056_s23, %s2056_s23, %s2057_s24  }
  0x33   :  { %s1843_s18 = scalar_lea.hbm %s2459_s9, 1024 }
  0x34   :  { %p1844_p2 = scmp.ne.s32.totalorder %s2459_s9, %s1843_s18  ;;  %p1847_p3 = scmp.lt.u32.totalorder %s1843_s18, %s2459_s9 }
  0x36   :  { %p1849_p4 = pnand %p1847_p3, %p1844_p2 }
  0x38   :  { %1852 = shalt.err (!%p1849_p4)
}
  0x39   :  { %s1853_s21 = scalar_lea.vmem %s104_s19, 1024  ;;  %p1858_p6 = scmp.lt.s32.totalorder %s104_s19, %s104_s19 }
  0x3a   :  { %p1854_p5 = scmp.ne.s32.totalorder %s104_s19, %s1853_s21  ;;  %p1859_p7 = scmp.lt.s32.totalorder %s1853_s21, %s1853_s21 }
  0x3c   :  { %p1860_p8 = por %p1859_p7, %p1858_p6 }
  0x3e   :  { %p1861_p9 = pnand %p1860_p8, %p1854_p5 }
  0x40   :  { %1864 = shalt.err (!%p1861_p9)
}
  0x41   :  { %109 = dma.hbm_to_vmem [thread:$0]  %s2459_s9, 1024, %s104_s19, [#allocation12], %s2056_s23, %s2056_s23, %s2057_s24  }
  0x42   :  { %s2060_s22 = smov [#allocation14]   ;;  %s2061_s28 = smov [#allocation2]  }
  0x43   :  { %s131_s2 = sshll.u32 %s2060_s22, 4  ;;  %s35_s0 = sshll.u32 %s2061_s28, 4  ;;  %s132_s2 = int_to_ptr.vmem [resolvable:$true] %s131_s2  ;;  %s36_s0 = int_to_ptr.vmem [resolvable:$true] %s35_s0 }
  0x44   :  { %s1865_s3 = scalar_lea.hbm %s2463_s13, 1024 }
  0x45   :  { %p1866_p10 = scmp.ne.s32.totalorder %s2463_s13, %s1865_s3  ;;  %p1869_p11 = scmp.lt.u32.totalorder %s1865_s3, %s2463_s13 }
  0x47   :  { %p1871_p12 = pnand %p1869_p11, %p1866_p10 }
  0x49   :  { %1874 = shalt.err (!%p1871_p12)
}
  0x4a   :  { %s1875_s9 = scalar_lea.vmem %s132_s2, 1024  ;;  %p1880_p0 = scmp.lt.s32.totalorder %s132_s2, %s132_s2 }
  0x4b   :  { %p1876_p13 = scmp.ne.s32.totalorder %s132_s2, %s1875_s9  ;;  %p1881_p1 = scmp.lt.s32.totalorder %s1875_s9, %s1875_s9 }
  0x4d   :  { %p1882_p2 = por %p1881_p1, %p1880_p0 }
  0x4f   :  { %p1883_p3 = pnand %p1882_p2, %p1876_p13 }
  0x51   :  { %1886 = shalt.err (!%p1883_p3)
}
  0x52   :  { %137 = dma.hbm_to_vmem [thread:$0]  %s2463_s13, 1024, %s132_s2, [#allocation15], %s2056_s23, %s2056_s23, %s2057_s24  }
  0x53   :  { %s2478_s29 = sld [smem:[#allocation27_spill]] }
  0x59   :  { %s1887_s22 = scalar_lea.hbm %s2478_s29, 256 }
  0x5a   :  { %p1888_p4 = scmp.ne.s32.totalorder %s2478_s29, %s1887_s22  ;;  %p1891_p5 = scmp.lt.u32.totalorder %s1887_s22, %s2478_s29 }
  0x5c   :  { %p1893_p6 = pnand %p1891_p5, %p1888_p4 }
  0x5e   :  { %1896 = shalt.err (!%p1893_p6)
}
  0x5f   :  { %s1897_s18 = scalar_lea.vmem %s36_s0, 256  ;;  %p1902_p8 = scmp.lt.s32.totalorder %s36_s0, %s36_s0 }
  0x60   :  { %p1898_p7 = scmp.ne.s32.totalorder %s36_s0, %s1897_s18  ;;  %p1903_p9 = scmp.lt.s32.totalorder %s1897_s18, %s1897_s18 }
  0x62   :  { %p1904_p10 = por %p1903_p9, %p1902_p8 }
  0x64   :  { %p1905_p11 = pnand %p1904_p10, %p1898_p7 }
  0x66   :  { %1908 = shalt.err (!%p1905_p11)
}
  0x67   :  { %s2062_s13 = smov 128   ;;  %s2063_s2 = smov 8  }
  0x68   :  { %41 = dma.hbm_to_vmem [thread:$0]  %s2478_s29, 256, %s36_s0, [#allocation3], %s2062_s13, %s2062_s13, %s2063_s2  }
  0x69   :  { %s2064_s1 = smov [#allocation7]   ;;  %s2065_s19 = smov [#allocation10]  }
  0x6a   :  { %s63_s9 = sshll.u32 %s2064_s1, 4  ;;  %s89_s20 = sshll.u32 %s2065_s19, 4  ;;  %s64_s9 = int_to_ptr.vmem [resolvable:$true] %s63_s9  ;;  %s90_s20 = int_to_ptr.vmem [resolvable:$true] %s89_s20 }
  0x6b   :  { %s1909_s22 = scalar_lea.hbm %s2454_s4, 1024 }
  0x6c   :  { %p1910_p12 = scmp.ne.s32.totalorder %s2454_s4, %s1909_s22  ;;  %p1913_p13 = scmp.lt.u32.totalorder %s1909_s22, %s2454_s4 }
  0x6e   :  { %p1915_p0 = pnand %p1913_p13, %p1910_p12 }
  0x70   :  { %1918 = shalt.err (!%p1915_p0)
}
  0x71   :  { %s1919_s0 = scalar_lea.vmem %s64_s9, 1024  ;;  %p1924_p2 = scmp.lt.s32.totalorder %s64_s9, %s64_s9 }
  0x72   :  { %p1920_p1 = scmp.ne.s32.totalorder %s64_s9, %s1919_s0  ;;  %p1925_p3 = scmp.lt.s32.totalorder %s1919_s0, %s1919_s0 }
  0x74   :  { %p1926_p4 = por %p1925_p3, %p1924_p2 }
  0x76   :  { %p1927_p5 = pnand %p1926_p4, %p1920_p1 }
  0x78   :  { %1930 = shalt.err (!%p1927_p5)
}
  0x79   :  { %69 = dma.hbm_to_vmem [thread:$0]  %s2454_s4, 1024, %s64_s9, [#allocation6], %s2056_s23, %s2056_s23, %s2057_s24  }
  0x7a   :  { %s1931_s1 = scalar_lea.hbm %s2457_s7, 1024 }
  0x7b   :  { %p1932_p6 = scmp.ne.s32.totalorder %s2457_s7, %s1931_s1  ;;  %p1935_p7 = scmp.lt.u32.totalorder %s1931_s1, %s2457_s7 }
  0x7d   :  { %p1937_p8 = pnand %p1935_p7, %p1932_p6 }
  0x7f   :  { %1940 = shalt.err (!%p1937_p8)
}
  0x80   :  { %s1941_s28 = scalar_lea.vmem %s90_s20, 1024  ;;  %p1946_p10 = scmp.lt.s32.totalorder %s90_s20, %s90_s20 }
  0x81   :  { %p1942_p9 = scmp.ne.s32.totalorder %s90_s20, %s1941_s28  ;;  %p1947_p11 = scmp.lt.s32.totalorder %s1941_s28, %s1941_s28 }
  0x83   :  { %p1948_p12 = por %p1947_p11, %p1946_p10 }
  0x85   :  { %p1949_p13 = pnand %p1948_p12, %p1942_p9 }
  0x87   :  { %1952 = shalt.err (!%p1949_p13)
}
  0x88   :  { %95 = dma.hbm_to_vmem [thread:$0]  %s2457_s7, 1024, %s90_s20, [#allocation9], %s2056_s23, %s2056_s23, %s2057_s24  }
  0x89   :  { %s2066_s25 = smov [#allocation13]   ;;  %s2067_s3 = smov [#allocation16]  }
  0x8a   :  { %s117_s26 = sshll.u32 %s2066_s25, 4  ;;  %s143_s0 = sshll.u32 %s2067_s3, 4  ;;  %s118_s26 = int_to_ptr.vmem [resolvable:$true] %s117_s26  ;;  %s144_s0 = int_to_ptr.vmem [resolvable:$true] %s143_s0 }
  0x8b   :  { %s1953_s27 = scalar_lea.hbm %s2461_s11, 1024 }
  0x8c   :  { %p1954_p0 = scmp.ne.s32.totalorder %s2461_s11, %s1953_s27  ;;  %p1957_p1 = scmp.lt.u32.totalorder %s1953_s27, %s2461_s11 }
  0x8e   :  { %p1959_p2 = pnand %p1957_p1, %p1954_p0 }
  0x90   :  { %1962 = shalt.err (!%p1959_p2)
}
  0x91   :  { %s1963_s7 = scalar_lea.vmem %s118_s26, 1024  ;;  %p1968_p4 = scmp.lt.s32.totalorder %s118_s26, %s118_s26 }
  0x92   :  { %p1964_p3 = scmp.ne.s32.totalorder %s118_s26, %s1963_s7  ;;  %p1969_p5 = scmp.lt.s32.totalorder %s1963_s7, %s1963_s7 }
  0x94   :  { %p1970_p6 = por %p1969_p5, %p1968_p4 }
  0x96   :  { %p1971_p7 = pnand %p1970_p6, %p1964_p3 }
  0x98   :  { %1974 = shalt.err (!%p1971_p7)
}
  0x99   :  { %123 = dma.hbm_to_vmem [thread:$0]  %s2461_s11, 1024, %s118_s26, [#allocation12], %s2056_s23, %s2056_s23, %s2057_s24  }
  0x9a   :  { %s1975_s4 = scalar_lea.hbm %s2464_s14, 1024 }
  0x9b   :  { %p1976_p8 = scmp.ne.s32.totalorder %s2464_s14, %s1975_s4  ;;  %p1979_p9 = scmp.lt.u32.totalorder %s1975_s4, %s2464_s14 }
  0x9d   :  { %p1981_p10 = pnand %p1979_p9, %p1976_p8 }
  0x9f   :  { %1984 = shalt.err (!%p1981_p10)
}
  0xa0   :  { %s1985_s18 = scalar_lea.vmem %s144_s0, 1024  ;;  %p1990_p12 = scmp.lt.s32.totalorder %s144_s0, %s144_s0 }
  0xa1   :  { %p1986_p11 = scmp.ne.s32.totalorder %s144_s0, %s1985_s18  ;;  %p1991_p13 = scmp.lt.s32.totalorder %s1985_s18, %s1985_s18 }
  0xa3   :  { %p1992_p0 = por %p1991_p13, %p1990_p12 }
  0xa5   :  { %p1993_p1 = pnand %p1992_p0, %p1986_p11 }
  0xa7   :  { %1996 = shalt.err (!%p1993_p1)
}
  0xa8   :  { %149 = dma.hbm_to_vmem [thread:$0]  %s2464_s14, 1024, %s144_s0, [#allocation15], %s2056_s23, %s2056_s23, %s2057_s24  }
  0xa9   :  { %s2068_s27 = smov [#allocation17]   ;;  %s1997_s21 = scalar_lea.hbm %s2466_s16, 2048 }
  0xaa   :  { %s157_s30 = sshll.u32 %s2068_s27, 4  ;;  %p1998_p2 = scmp.ne.s32.totalorder %s2466_s16, %s1997_s21  ;;  %s158_s30 = int_to_ptr.vmem [resolvable:$true] %s157_s30 }
  0xab   :  { %p2001_p3 = scmp.lt.u32.totalorder %s1997_s21, %s2466_s16 }
  0xad   :  { %p2003_p4 = pnand %p2001_p3, %p1998_p2 }
  0xaf   :  { %2006 = shalt.err (!%p2003_p4)
}
  0xb0   :  { %s2007_s28 = scalar_lea.vmem %s158_s30, 2048  ;;  %p2012_p6 = scmp.lt.s32.totalorder %s158_s30, %s158_s30 }
  0xb1   :  { %p2008_p5 = scmp.ne.s32.totalorder %s158_s30, %s2007_s28  ;;  %p2013_p7 = scmp.lt.s32.totalorder %s2007_s28, %s2007_s28 }
  0xb3   :  { %p2014_p8 = por %p2013_p7, %p2012_p6 }
  0xb5   :  { %p2015_p9 = pnand %p2014_p8, %p2008_p5 }
  0xb7   :  { %2018 = shalt.err (!%p2015_p9)
}
  0xb8   :  { %163 = dma.hbm_to_vmem [thread:$0]  %s2466_s16, 2048, %s158_s30, [#allocation18], %s2062_s13, %s2062_s13, %s2063_s2  }
  0xb9   :  { %2041 = dma.done.wait [#allocation3], 256  }
  0xba   :  { %2042 = vsyncadd [#allocation3], 4294967040 }
  0xbb   :  { %2043 = dma.done.wait [#allocation6], 1152  }
  0xbc   :  { %2044 = vsyncadd [#allocation6], 4294966144 }
  0xbd   :  { %2045 = dma.done.wait [#allocation9], 2048  }
  0xbe   :  { %2046 = vsyncadd [#allocation9], 4294965248 }
  0xbf   :  { %2047 = dma.done.wait [#allocation12], 2048  }
  0xc0   :  { %2048 = vsyncadd [#allocation12], 4294965248 }
  0xc1   :  { %2049 = dma.done.wait [#allocation15], 2048  }
  0xc2   :  { %2050 = vsyncadd [#allocation15], 4294965248 }
  0xc3   :  { %2051 = dma.done.wait [#allocation18], 2048  }
  0xc4   :  { %2052 = vsyncadd [#allocation18], 4294965248  ;;  %v2069_v0 = vmov 0.0   ;;  %vm2070_vm0 = vmmov 0   ;;  %v1738_v1 = vld [vmem:[#allocation7] sm:$0xff]   ;;  %v1739_v2 = vld [vmem:[#allocation7 + $0x8] sm:$0xff]  }
  0xc5   :  { %1493 = vmatprep.subr.bf16.mxu0 %v2069_v0  ;;  %1509 = vmatprep.mubr.msk.bf16.mxu0 %vm2070_vm0, %v2069_v0  ;;  %v1740_v3 = vld [vmem:[#allocation7 + $0x10] sm:$0xff]   ;;  %v1741_v4 = vld [vmem:[#allocation7 + $0x18] sm:$0xff]   ;;  %v1742_v5 = vld [vmem:[#allocation7 + $0x20] sm:$0xff]   ;;  %vm324_vm1 = vcmask 130048   ;;  %s2479_s3 = sld [smem:[#allocation29_spill]]  ;;  %s2480_s26 = sld [smem:[#allocation30_spill]] }
  0xc6   :  { %1513 = vmatprep.subr.bf16.mxu1 %v2069_v0  ;;  %1515 = vmatprep.mubr.msk.bf16.mxu1 %vm2070_vm0, %v2069_v0  ;;  %v1743_v6 = vld [vmem:[#allocation7 + $0x28] sm:$0xff]   ;;  %v1744_v7 = vld [vmem:[#allocation7 + $0x30] sm:$0xff]   ;;  %v1745_v8 = vld [vmem:[#allocation7 + $0x38] sm:$0xff]   ;;  %vm1302_vm2 = vcmask 1041408  }
  0xc7   :  { %1494 = vmatpush3.bf16.msra.mxu0 %v1738_v1  ;;  %v197_v9 = vld [vmem:[#allocation2] sm:$0xff]  ;;  %v198_v10 = vld [vmem:[#allocation2 + $0x8] sm:$0xff]  ;;  %v1748_v12 = vld [vmem:[#allocation8] sm:$0xff]  }
  0xc8   :  { %1495 = vmatprep.subr.bf16.mxu0 %v2069_v0  ;;  %v2331_v11 = vpack.c.bf16 %v198_v10, %v197_v9  ;;  %v1750_v13 = vld [vmem:[#allocation8 + $0x8] sm:$0xff]   ;;  %v1752_v14 = vld [vmem:[#allocation8 + $0x10] sm:$0xff]   ;;  %v1754_v15 = vld [vmem:[#allocation8 + $0x18] sm:$0xff]  }
  0xc9   :  { %v1756_v16 = vld [vmem:[#allocation8 + $0x20] sm:$0xff]   ;;  %v1758_v17 = vld [vmem:[#allocation8 + $0x28] sm:$0xff]   ;;  %v1760_v18 = vld [vmem:[#allocation8 + $0x30] sm:$0xff]  }
  0xca   :  { %v1336_v19 = vld [vmem:[%s2455_s5] ss:$0 sm:$0xff]  ;;  %v2347_v31 = vld [vmem:[#allocation5] sm:$0xff]   ;;  %v1747_v32 = vld [vmem:[#allocation10] sm:$0xff]  }
  0xcb   :  { %1496 = vmatpush3.bf16.msra.mxu0 %v1739_v2  ;;  %v1749_v33 = vld [vmem:[#allocation10 + $0x8] sm:$0xff]   ;;  %v1751_v34 = vld [vmem:[#allocation10 + $0x10] sm:$0xff]   ;;  %v1753_v35 = vld [vmem:[#allocation10 + $0x18] sm:$0xff]  }
  0xcc   :  { %1497 = vmatprep.subr.bf16.mxu0 %v2069_v0  ;;  %v1755_v36 = vld [vmem:[#allocation10 + $0x20] sm:$0xff]   ;;  %v1757_v37 = vld [vmem:[#allocation10 + $0x28] sm:$0xff]   ;;  %v1759_v38 = vld [vmem:[#allocation10 + $0x30] sm:$0xff]  }
  0xcd   :  { %v1761_v39 = vld [vmem:[#allocation10 + $0x38] sm:$0xff]   ;;  %v1763_v50 = vld [vmem:[#allocation11] sm:$0xff]   ;;  %v1764_v51 = vld [vmem:[#allocation11 + $0x8] sm:$0xff]  }
  0xce   :  { %v1762_v40 = vld [vmem:[#allocation8 + $0x38] sm:$0xff]   ;;  %v1765_v52 = vld [vmem:[#allocation11 + $0x10] sm:$0xff]   ;;  %v1767_v54 = vld [vmem:[#allocation11 + $0x20] sm:$0xff]  }
  0xcf   :  { %1498 = vmatpush3.bf16.msra.mxu0 %v1740_v3  ;;  %v1766_v53 = vld [vmem:[#allocation11 + $0x18] sm:$0xff]   ;;  %v1768_v55 = vld [vmem:[#allocation11 + $0x28] sm:$0xff]   ;;  %v1771_v9 = vld [vmem:[#allocation13] sm:$0xff]  }
  0xd0   :  { %1499 = vmatprep.subr.bf16.mxu0 %v2069_v0  ;;  %v1363_v56 = vld [vmem:[%s2458_s8] ss:$0 sm:$0xff] }
  0xd1   :  { %v1772_v10 = vld [vmem:[#allocation13 + $0x8] sm:$0xff]  }
  0xd3   :  { %1500 = vmatpush3.bf16.msra.mxu0 %v1741_v4 }
  0xd4   :  { %1501 = vmatprep.subr.bf16.mxu0 %v2069_v0 }
  0xd7   :  { %1502 = vmatpush3.bf16.msra.mxu0 %v1742_v5 }
  0xd8   :  { %1503 = vmatprep.subr.bf16.mxu0 %v2069_v0 }
  0xdb   :  { %1504 = vmatpush3.bf16.msra.mxu0 %v1743_v6 }
  0xdc   :  { %1505 = vmatprep.subr.bf16.mxu0 %v2069_v0 }
  0xdf   :  { %1506 = vmatpush3.bf16.msra.mxu0 %v1744_v7  ;;  %v1769_v7 = vld [vmem:[#allocation11 + $0x30] sm:$0xff]  }
  0xe0   :  { %1507 = vmatprep.subr.bf16.mxu0 %v2069_v0 }
  0xe3   :  { %1508 = vmatpush3.bf16.msra.mxu0 %v1745_v8  ;;  %v1770_v8 = vld [vmem:[#allocation11 + $0x38] sm:$0xff]  }
  0xe4   :  { %1539 = vmatprep.subr.bf16.mxu0 %v2069_v0 }
  0xe6   :  { %1510 = vmatmul.mubr.bf16.vlgmr.msra.gmra.mrb[0].mxu0 %v2331_v11 }
  0xe7   :  { %1555 = vmatprep.mubr.msk.bf16.mxu0 %vm2070_vm0, %v2069_v0  ;;  %1540 = vmatpush3.bf16.msra.mxu0 %v1748_v12  ;;  %v1774_v12 = vld [vmem:[#allocation13 + $0x18] sm:$0xff]  }
  0xe8   :  { %1541 = vmatprep.subr.bf16.mxu0 %v2069_v0 }
  0xeb   :  { %1542 = vmatpush3.bf16.msra.mxu0 %v1750_v13  ;;  %v1775_v13 = vld [vmem:[#allocation13 + $0x20] sm:$0xff]  }
  0xec   :  { %1543 = vmatprep.subr.bf16.mxu0 %v2069_v0 }
  0xef   :  { %1544 = vmatpush3.bf16.msra.mxu0 %v1752_v14  ;;  %v1776_v14 = vld [vmem:[#allocation13 + $0x28] sm:$0xff]  }
  0xf0   :  { %1545 = vmatprep.subr.bf16.mxu0 %v2069_v0 }
  0xf3   :  { %1546 = vmatpush3.bf16.msra.mxu0 %v1754_v15 }
  0xf4   :  { %1547 = vmatprep.subr.bf16.mxu0 %v2069_v0 }
  0xf7   :  { %1548 = vmatpush3.bf16.msra.mxu0 %v1756_v16 }
  0xf8   :  { %1549 = vmatprep.subr.bf16.mxu0 %v2069_v0 }
  0xfb   :  { %1550 = vmatpush3.bf16.msra.mxu0 %v1758_v17 }
  0xfc   :  { %1551 = vmatprep.subr.bf16.mxu0 %v2069_v0 }
  0xff   :  { %1552 = vmatpush3.bf16.msra.mxu0 %v1760_v18 }
 0x100   :  { %1553 = vmatprep.subr.bf16.mxu0 %v2069_v0 }
 0x103   :  { %1554 = vmatpush3.bf16.msra.mxu0 %v1762_v40  ;;  %v1374_v40 = vld [vmem:[%s2462_s12] ss:$0 sm:$0xff] }
 0x104   :  { %1559 = vmatprep.subr.bf16.mxu0 %v2069_v0 }
 0x1b9   :  { %v307_v20 = vpop.f32.mrb[0].mxu0 }
 0x1ba   :  { %v308_v21 = vadd.f32 %v1336_v19, %v307_v20  ;;  %v1511_v22 = vpop.f32.mrb[1].mxu0 }
 0x1bb   :  { %v310_v23 = vpop.f32.mrb[2].mxu0  ;;  %v1777_v22 = vld [vmem:[#allocation13 + $0x30] sm:$0xff]  }
 0x1bc   :  { %v314_v24 = vmax.f32 %v308_v21, 0.0  ;;  %v311_v25 = vadd.f32 %v1336_v19, %v310_v23  ;;  %v1512_v26 = vpop.f32.mrb[3].mxu0  ;;  %v1778_v23 = vld [vmem:[#allocation13 + $0x38] sm:$0xff]  }
 0x1be   :  { %v315_v27 = vmax.f32 %v311_v25, 0.0  ;;  %v316_v28 = vadd.f32 1e-07, %v314_v24  ;;  %v1365_v24 = vld [vmem:[%s2460_s10] ss:$0 sm:$0xff] }
 0x1c0   :  { %v317_v29 = vadd.f32 1e-07, %v315_v27 }
 0x1c2   :  { %v318_v30 = vpack.c.bf16 %v317_v29, %v316_v28 }
 0x1c4   :  { %1514 = vmatpush3.bf16.msra.mxu1 %v318_v30 }
 0x1c5   :  { %1519 = vmatprep.subr.bf16.mxu1 %v2069_v0 }
 0x1c7   :  { %1516 = vmatmul.mubr.msk.bf16.vlgmr.msra.gmra.mrb[0].mxu1 %vm324_vm1, %v2347_v31 }
 0x1c8   :  { %1520 = vmatpush3.bf16.msra.mxu1 %v1747_v32  ;;  %1535 = vmatprep.mubr.msk.bf16.mxu1 %vm2070_vm0, %v2069_v0 }
 0x1c9   :  { %1521 = vmatprep.subr.bf16.mxu1 %v2069_v0 }
 0x1cc   :  { %1522 = vmatpush3.bf16.msra.mxu1 %v1749_v33  ;;  %v1787_v33 = vld [vmem:[#allocation14] sm:$0xff]  }
 0x1cd   :  { %1523 = vmatprep.subr.bf16.mxu1 %v2069_v0 }
 0x1d0   :  { %1524 = vmatpush3.bf16.msra.mxu1 %v1751_v34  ;;  %v1788_v34 = vld [vmem:[#allocation14 + $0x8] sm:$0xff]  }
 0x1d1   :  { %1525 = vmatprep.subr.bf16.mxu1 %v2069_v0 }
 0x1d4   :  { %1526 = vmatpush3.bf16.msra.mxu1 %v1753_v35  ;;  %v1789_v35 = vld [vmem:[#allocation14 + $0x10] sm:$0xff]  }
 0x1d5   :  { %1527 = vmatprep.subr.bf16.mxu1 %v2069_v0 }
 0x1d8   :  { %1528 = vmatpush3.bf16.msra.mxu1 %v1755_v36  ;;  %v1790_v36 = vld [vmem:[#allocation14 + $0x18] sm:$0xff]  }
 0x1d9   :  { %1529 = vmatprep.subr.bf16.mxu1 %v2069_v0 }
 0x1dc   :  { %1530 = vmatpush3.bf16.msra.mxu1 %v1757_v37  ;;  %v1791_v37 = vld [vmem:[#allocation14 + $0x20] sm:$0xff]  }
 0x1dd   :  { %1531 = vmatprep.subr.bf16.mxu1 %v2069_v0 }
 0x1e0   :  { %1532 = vmatpush3.bf16.msra.mxu1 %v1759_v38  ;;  %v1792_v38 = vld [vmem:[#allocation14 + $0x28] sm:$0xff]  }
 0x1e1   :  { %1533 = vmatprep.subr.bf16.mxu1 %v2069_v0 }
 0x1e4   :  { %1534 = vmatpush3.bf16.msra.mxu1 %v1761_v39  ;;  %v1793_v39 = vld [vmem:[#allocation14 + $0x30] sm:$0xff]  }
 0x1e5   :  { %1565 = vmatprep.subr.bf16.mxu1 %v2069_v0 }
 0x1e7   :  { %1536 = vmatmul.mubr.bf16.vlgmr.msra.gmra.mrb[4].mxu1 %v2331_v11  ;;  %v1773_v11 = vld [vmem:[#allocation13 + $0x10] sm:$0xff]  }
 0x1e8   :  { %1581 = vmatprep.mubr.msk.bf16.mxu1 %vm2070_vm0, %v2069_v0  ;;  %1566 = vmatpush3.bf16.msra.mxu1 %v1763_v50 }
 0x1e9   :  { %1567 = vmatprep.subr.bf16.mxu1 %v2069_v0 }
 0x1ec   :  { %1568 = vmatpush3.bf16.msra.mxu1 %v1764_v51 }
 0x1ed   :  { %1569 = vmatprep.subr.bf16.mxu1 %v2069_v0 }
 0x1f0   :  { %1570 = vmatpush3.bf16.msra.mxu1 %v1765_v52  ;;  %v1779_v52 = vld [vmem:[#allocation16] sm:$0xff]  }
 0x1f1   :  { %1571 = vmatprep.subr.bf16.mxu1 %v2069_v0 }
 0x1f4   :  { %1572 = vmatpush3.bf16.msra.mxu1 %v1766_v53  ;;  %v1780_v53 = vld [vmem:[#allocation16 + $0x8] sm:$0xff]  }
 0x1f5   :  { %1573 = vmatprep.subr.bf16.mxu1 %v2069_v0 }
 0x1f8   :  { %1574 = vmatpush3.bf16.msra.mxu1 %v1767_v54  ;;  %v1781_v54 = vld [vmem:[#allocation16 + $0x10] sm:$0xff]  }
 0x1f9   :  { %1575 = vmatprep.subr.bf16.mxu1 %v2069_v0 }
 0x1fc   :  { %1576 = vmatpush3.bf16.msra.mxu1 %v1768_v55  ;;  %v1782_v55 = vld [vmem:[#allocation16 + $0x18] sm:$0xff]  }
 0x1fd   :  { %1577 = vmatprep.subr.bf16.mxu1 %v2069_v0 }
 0x200   :  { %1578 = vmatpush3.bf16.msra.mxu1 %v1769_v7  ;;  %v1201_v7 = vld [vmem:[#allocation17] sm:$0xff] }
 0x201   :  { %1579 = vmatprep.subr.bf16.mxu1 %v2069_v0 }
 0x204   :  { %1580 = vmatpush3.bf16.msra.mxu1 %v1770_v8  ;;  %v1202_v8 = vld [vmem:[#allocation17 + $0x8] sm:$0xff] }
 0x205   :  { %1605 = vmatprep.subr.bf16.mxu1 %v2069_v0 }
 0x29a   :  { %v362_v41 = vpop.f32.mrb[0].mxu1 }
 0x29b   :  { %v1517_v42 = vpop.f32.mrb[1].mxu1 }
 0x29c   :  { %v365_v43 = vpop.f32.mrb[2].mxu1 }
 0x29d   :  { %v402_v44 = vpack.c.bf16 %v365_v43, %v362_v41  ;;  %v1518_v45 = vpop.f32.mrb[3].mxu1 }
 0x29f   :  { %1556 = vmatmul.mubr.bf16.vlgmr.msra.gmra.mrb[4].mxu0 %v402_v44 }
 0x2a0   :  { %1561 = vmatprep.mubr.msk.bf16.mxu0 %vm2070_vm0, %v2069_v0 }
 0x2ba   :  { %v485_v46 = vpop.f32.mrb[4].mxu1 }
 0x2bb   :  { %v1537_v47 = vpop.f32.mrb[5].mxu1 }
 0x2bc   :  { %v488_v48 = vpop.f32.mrb[6].mxu1 }
 0x2bd   :  { %v1538_v49 = vpop.f32.mrb[7].mxu1 }
 0x372   :  { %v574_v57 = vpop.f32.mrb[4].mxu0 }
 0x373   :  { %v575_v58 = vadd.f32 %v574_v57, %v485_v46  ;;  %v1557_v59 = vpop.f32.mrb[5].mxu0  ;;  %v1785_v57 = vld [vmem:[#allocation16 + $0x30] sm:$0xff]  }
 0x374   :  { %v577_v60 = vpop.f32.mrb[6].mxu0  ;;  %v1794_v59 = vld [vmem:[#allocation14 + $0x38] sm:$0xff]  }
 0x375   :  { %v587_v61 = vadd.f32 %v1363_v56, %v575_v58  ;;  %v578_v62 = vadd.f32 %v577_v60, %v488_v48  ;;  %v1558_v63 = vpop.f32.mrb[7].mxu0  ;;  %v1786_v58 = vld [vmem:[#allocation16 + $0x38] sm:$0xff]  }
 0x377   :  { %v589_v1 = vmax.f32 %v587_v61, 0.0  ;;  %v588_v2 = vadd.f32 %v1363_v56, %v578_v62  ;;  %v1783_v56 = vld [vmem:[#allocation16 + $0x20] sm:$0xff]  }
 0x379   :  { %v590_v3 = vmax.f32 %v588_v2, 0.0  ;;  %v591_v4 = vadd.f32 1e-07, %v589_v1 }
 0x37b   :  { %v592_v5 = vadd.f32 1e-07, %v590_v3 }
 0x37d   :  { %v593_v6 = vpack.c.bf16 %v592_v5, %v591_v4 }
 0x37f   :  { %1560 = vmatpush3.bf16.msra.mxu0 %v593_v6  ;;  %v2071_v6 = vmov 0.0|0.0  }
 0x380   :  { %1585 = vmatprep.subr.bf16.mxu0 %v2069_v0 }
 0x382   :  { %1562 = vmatmul.mubr.msk.bf16.vlgmr.msra.gmra.mrb[8].mxu0 %vm324_vm1, %v2347_v31 }
 0x383   :  { %1601 = vmatprep.mubr.msk.bf16.mxu0 %vm2070_vm0, %v2069_v0  ;;  %1586 = vmatpush3.bf16.msra.mxu0 %v1771_v9  ;;  %v1203_v9 = vld [vmem:[#allocation17 + $0x10] sm:$0xff] }
 0x384   :  { %1587 = vmatprep.subr.bf16.mxu0 %v2069_v0 }
 0x387   :  { %1588 = vmatpush3.bf16.msra.mxu0 %v1772_v10  ;;  %v1697_v10 = vpack.c.bf16 %v1202_v8, %v1201_v7 }
 0x388   :  { %1589 = vmatprep.subr.bf16.mxu0 %v2069_v0 }
 0x38b   :  { %1590 = vmatpush3.bf16.msra.mxu0 %v1773_v11  ;;  %v1204_v11 = vld [vmem:[#allocation17 + $0x18] sm:$0xff] }
 0x38c   :  { %1591 = vmatprep.subr.bf16.mxu0 %v2069_v0 }
 0x38f   :  { %1592 = vmatpush3.bf16.msra.mxu0 %v1774_v12  ;;  %v1700_v12 = vpack.c.bf16 %v1204_v11, %v1203_v9 }
 0x390   :  { %1593 = vmatprep.subr.bf16.mxu0 %v2069_v0 }
 0x393   :  { %1594 = vmatpush3.bf16.msra.mxu0 %v1775_v13  ;;  %v1205_v13 = vld [vmem:[#allocation17 + $0x20] sm:$0xff] }
 0x394   :  { %1595 = vmatprep.subr.bf16.mxu0 %v2069_v0 }
 0x397   :  { %1596 = vmatpush3.bf16.msra.mxu0 %v1776_v14  ;;  %v1206_v14 = vld [vmem:[#allocation17 + $0x28] sm:$0xff] }
 0x398   :  { %1597 = vmatprep.subr.bf16.mxu0 %v2069_v0 }
 0x39b   :  { %1598 = vmatpush3.bf16.msra.mxu0 %v1777_v22  ;;  %v1212_v22 = vld [vmem:[#allocation17 + $0x58] sm:$0xff] }
 0x39c   :  { %1599 = vmatprep.subr.bf16.mxu0 %v2069_v0 }
 0x39f   :  { %1600 = vmatpush3.bf16.msra.mxu0 %v1778_v23 }
 0x3a0   :  { %1631 = vmatprep.subr.bf16.mxu0 %v2069_v0 }
 0x455   :  { %v645_v15 = vpop.f32.mrb[8].mxu0 }
 0x456   :  { %v1563_v16 = vpop.f32.mrb[9].mxu0  ;;  %v646_v18 = vadd.f32 %v645_v15, %v587_v61  ;;  %v1703_v15 = vpack.c.bf16 %v1206_v14, %v1205_v13 }
 0x457   :  { %v648_v17 = vpop.f32.mrb[10].mxu0  ;;  %v1208_v16 = vld [vmem:[#allocation17 + $0x38] sm:$0xff] }
 0x458   :  { %v649_v19 = vadd.f32 %v648_v17, %v588_v2  ;;  %v1564_v20 = vpop.f32.mrb[11].mxu0 }
 0x45a   :  { %v652_v21 = vpack.c.bf16 %v649_v19, %v646_v18  ;;  %v1209_v18 = vld [vmem:[#allocation17 + $0x40] sm:$0xff]  ;;  %v1210_v19 = vld [vmem:[#allocation17 + $0x48] sm:$0xff] }
 0x45b   :  { %v1709_v20 = vpack.c.bf16 %v1210_v19, %v1209_v18 }
 0x45c   :  { %1582 = vmatmul.mubr.bf16.vlgmr.msra.gmra.mrb[8].mxu1 %v652_v21  ;;  %v1211_v21 = vld [vmem:[#allocation17 + $0x50] sm:$0xff] }
 0x45d   :  { %1607 = vmatprep.mubr.msk.bf16.mxu1 %vm2070_vm0, %v2069_v0  ;;  %v1712_v23 = vpack.c.bf16 %v1212_v22, %v1211_v21 }
 0x52f   :  { %v741_v25 = vpop.f32.mrb[8].mxu1 }
 0x530   :  { %v1583_v26 = vpop.f32.mrb[9].mxu1  ;;  %v742_v28 = vadd.f32 %v1365_v24, %v741_v25  ;;  %v1214_v25 = vld [vmem:[#allocation17 + $0x68] sm:$0xff] }
 0x531   :  { %v744_v27 = vpop.f32.mrb[10].mxu1 }
 0x532   :  { %v745_v29 = vadd.f32 %v1365_v24, %v744_v27  ;;  %v1584_v30 = vpop.f32.mrb[11].mxu1  ;;  %v1213_v24 = vld [vmem:[#allocation17 + $0x60] sm:$0xff]  ;;  %v1215_v27 = vld [vmem:[#allocation17 + $0x70] sm:$0xff] }
 0x533   :  { %v1715_v26 = vpack.c.bf16 %v1214_v25, %v1213_v24 }
 0x534   :  { %v765_v32 = vpack.c.bf16 %v745_v29, %v742_v28  ;;  %v1216_v28 = vld [vmem:[#allocation17 + $0x78] sm:$0xff] }
 0x535   :  { %v1718_v29 = vpack.c.bf16 %v1216_v28, %v1215_v27 }
 0x536   :  { %1602 = vmatmul.mubr.bf16.vlgmr.msra.gmra.mrb[12].mxu0 %v765_v32 }
 0x537   :  { %1647 = vmatprep.mubr.msk.bf16.mxu0 %vm2070_vm0, %v2069_v0  ;;  %1632 = vmatpush3.bf16.msra.mxu0 %v1787_v33 }
 0x538   :  { %1633 = vmatprep.subr.bf16.mxu0 %v2069_v0 }
 0x53b   :  { %1634 = vmatpush3.bf16.msra.mxu0 %v1788_v34  ;;  %v1400_v34 = vld [vmem:[%s2465_s15] ss:$0 sm:$0xff] }
 0x53c   :  { %1635 = vmatprep.subr.bf16.mxu0 %v2069_v0 }
 0x53f   :  { %1636 = vmatpush3.bf16.msra.mxu0 %v1789_v35 }
 0x540   :  { %1637 = vmatprep.subr.bf16.mxu0 %v2069_v0 }
 0x543   :  { %1638 = vmatpush3.bf16.msra.mxu0 %v1790_v36 }
 0x544   :  { %1639 = vmatprep.subr.bf16.mxu0 %v2069_v0 }
 0x547   :  { %1640 = vmatpush3.bf16.msra.mxu0 %v1791_v37 }
 0x548   :  { %1641 = vmatprep.subr.bf16.mxu0 %v2069_v0 }
 0x54b   :  { %1642 = vmatpush3.bf16.msra.mxu0 %v1792_v38 }
 0x54c   :  { %1643 = vmatprep.subr.bf16.mxu0 %v2069_v0 }
 0x54f   :  { %1644 = vmatpush3.bf16.msra.mxu0 %v1793_v39 }
 0x550   :  { %1645 = vmatprep.subr.bf16.mxu0 %v2069_v0 }
 0x553   :  { %1646 = vmatpush3.bf16.msra.mxu0 %v1794_v59 }
 0x554   :  { %1693 = vmatprep.subr.bf16.mxu0 %v2071_v6 }
 0x609   :  { %v854_v41 = vpop.f32.mrb[12].mxu0 }
 0x60a   :  { %v855_v42 = vadd.f32 %v1374_v40, %v854_v41  ;;  %v1603_v43 = vpop.f32.mrb[13].mxu0  ;;  %v1127_v41 = vld [vmem:[%s2479_s3] sm:$0x3] }
 0x60b   :  { %v857_v44 = vpop.f32.mrb[14].mxu0 }
 0x60c   :  { %v861_v45 = vmax.f32 %v855_v42, 0.0  ;;  %v858_v46 = vadd.f32 %v1374_v40, %v857_v44  ;;  %v1604_v47 = vpop.f32.mrb[15].mxu0  ;;  %v1402_v44 = vld [vmem:[%s2467_s17] ss:$0 sm:$0xff]  ;;  %s2072_s17 = smov [#allocation19]  }
 0x60d   :  { %s1322_s27 = sshll.u32 %s2072_s17, 4  ;;  %s1323_s27 = int_to_ptr.vmem [resolvable:$true] %s1322_s27 }
 0x60e   :  { %v862_v48 = vmax.f32 %v858_v46, 0.0  ;;  %v863_v49 = vadd.f32 1e-07, %v861_v45  ;;  %v1403_v46 = vld [vmem:[%s2480_s26] ss:$0 sm:$0xff]  ;;  %s2019_s30 = scalar_lea.vmem %s1323_s27, 32  ;;  %p2024_p11 = scmp.lt.s32.totalorder %s1323_s27, %s1323_s27 }
 0x60f   :  { %p2020_p10 = scmp.ne.s32.totalorder %s1323_s27, %s2019_s30  ;;  %p2025_p12 = scmp.lt.s32.totalorder %s2019_s30, %s2019_s30 }
 0x610   :  { %v864_v50 = vadd.f32 1e-07, %v862_v48 }
 0x611   :  { %p2026_p13 = por %p2025_p12, %p2024_p11 }
 0x612   :  { %v865_v51 = vpack.c.bf16 %v864_v50, %v863_v49 }
 0x613   :  { %p2027_p0 = pnand %p2026_p13, %p2020_p10 }
 0x614   :  { %1606 = vmatpush3.bf16.msra.mxu1 %v865_v51 }
 0x615   :  { %1611 = vmatprep.subr.bf16.mxu1 %v2069_v0 }
 0x617   :  { %1608 = vmatmul.mubr.msk.bf16.vlgmr.msra.gmra.mrb[12].mxu1 %vm324_vm1, %v2347_v31  ;;  %v1784_v31 = vld [vmem:[#allocation16 + $0x28] sm:$0xff]  }
 0x618   :  { %1612 = vmatpush3.bf16.msra.mxu1 %v1779_v52  ;;  %1627 = vmatprep.mubr.msk.bf16.mxu1 %vm2070_vm0, %v2069_v0 }
 0x619   :  { %1613 = vmatprep.subr.bf16.mxu1 %v2069_v0 }
 0x61c   :  { %1614 = vmatpush3.bf16.msra.mxu1 %v1780_v53 }
 0x61d   :  { %1615 = vmatprep.subr.bf16.mxu1 %v2069_v0 }
 0x620   :  { %1616 = vmatpush3.bf16.msra.mxu1 %v1781_v54 }
 0x621   :  { %1617 = vmatprep.subr.bf16.mxu1 %v2069_v0 }
 0x624   :  { %1618 = vmatpush3.bf16.msra.mxu1 %v1782_v55 }
 0x625   :  { %1619 = vmatprep.subr.bf16.mxu1 %v2069_v0 }
 0x628   :  { %1620 = vmatpush3.bf16.msra.mxu1 %v1783_v56 }
 0x629   :  { %1621 = vmatprep.subr.bf16.mxu1 %v2069_v0 }
 0x62c   :  { %1622 = vmatpush3.bf16.msra.mxu1 %v1784_v31 }
 0x62d   :  { %1623 = vmatprep.subr.bf16.mxu1 %v2069_v0 }
 0x630   :  { %1624 = vmatpush3.bf16.msra.mxu1 %v1785_v57 }
 0x631   :  { %1625 = vmatprep.subr.bf16.mxu1 %v2069_v0 }
 0x634   :  { %1626 = vmatpush3.bf16.msra.mxu1 %v1786_v58 }
 0x635   :  { %1696 = vmatprep.subr.bf16.mxu1 %v2071_v6 }
 0x637   :  { %1628 = vmatmul.mubr.bf16.vlgmr.msra.gmra.mrb[16].mxu1 %v765_v32 }
 0x638   :  { %1690 = vmatprep.mubr.msk.f32.mxu1 %vm2070_vm0, %v2069_v0  ;;  %1698 = vmatpush3.bf16.msra.mxu1 %v1697_v10 }
 0x639   :  { %1699 = vmatprep.subr.bf16.mxu1 %v2071_v6 }
 0x63c   :  { %1701 = vmatpush3.bf16.msra.mxu1 %v1700_v12 }
 0x63d   :  { %1702 = vmatprep.subr.bf16.mxu1 %v2071_v6 }
 0x640   :  { %1704 = vmatpush3.bf16.msra.mxu1 %v1703_v15 }
 0x641   :  { %1705 = vmatprep.subr.bf16.mxu1 %v2071_v6 }
 0x6ea   :  { %v900_v60 = vpop.f32.mrb[12].mxu1 }
 0x6eb   :  { %v1609_v61 = vpop.f32.mrb[13].mxu1 }
 0x6ec   :  { %v903_v62 = vpop.f32.mrb[14].mxu1 }
 0x6ed   :  { %v940_v63 = vpack.c.bf16 %v903_v62, %v900_v60  ;;  %v1610_v1 = vpop.f32.mrb[15].mxu1 }
 0x6ef   :  { %1648 = vmatmul.mubr.bf16.vlgmr.msra.gmra.mrb[16].mxu0 %v940_v63 }
 0x6f0   :  { %1655 = vmatprep.mubr.msk.f32.mxu0 %vm2070_vm0, %v2069_v0  ;;  %v1207_v0 = vld [vmem:[#allocation17 + $0x30] sm:$0xff] }
 0x6f1   :  { %v1706_v17 = vpack.c.bf16 %v1208_v16, %v1207_v0 }
 0x6f3   :  { %1707 = vmatpush3.bf16.msra.mxu1 %v1706_v17 }
 0x6f4   :  { %1708 = vmatprep.subr.bf16.mxu1 %v2071_v6 }
 0x6f7   :  { %1710 = vmatpush3.bf16.msra.mxu1 %v1709_v20 }
 0x6f8   :  { %1711 = vmatprep.subr.bf16.mxu1 %v2071_v6 }
 0x6fb   :  { %1713 = vmatpush3.bf16.msra.mxu1 %v1712_v23 }
 0x6fc   :  { %1714 = vmatprep.subr.bf16.mxu1 %v2071_v6 }
 0x6ff   :  { %1716 = vmatpush3.bf16.msra.mxu1 %v1715_v26 }
 0x700   :  { %1717 = vmatprep.subr.bf16.mxu1 %v2071_v6 }
 0x703   :  { %1719 = vmatpush3.bf16.msra.mxu1 %v1718_v29 }
 0x70a   :  { %v1023_v2 = vpop.f32.mrb[16].mxu1 }
 0x70b   :  { %v1629_v3 = vpop.f32.mrb[17].mxu1 }
 0x70c   :  { %v1026_v4 = vpop.f32.mrb[18].mxu1 }
 0x70d   :  { %v1630_v5 = vpop.f32.mrb[19].mxu1 }
 0x7c2   :  { %v1112_v30 = vpop.f32.mrb[16].mxu0 }
 0x7c3   :  { %v1113_v32 = vadd.f32 %v1112_v30, %v1023_v2  ;;  %v1649_v33 = vpop.f32.mrb[17].mxu0 }
 0x7c4   :  { %v1115_v35 = vpop.f32.mrb[18].mxu0 }
 0x7c5   :  { %v1116_v36 = vadd.f32 %v1115_v35, %v1026_v4  ;;  %v1650_v37 = vpop.f32.mrb[19].mxu0  ;;  %v1125_v38 = vadd.f32 %v1400_v34, %v1113_v32 }
 0x7c7   :  { %v1126_v39 = vadd.f32 %v1400_v34, %v1116_v36 }
 0x7c9   :  { %v1694_v40 = vpack.c.bf16 %v1126_v39, %v1125_v38 }
 0x7cb   :  { %1695 = vmatpush3.bf16.msra.mxu0 %v1694_v40 }
 0x7ce   :  { %1656 = vmatmul.mubr.msk.f32.vlgmr.msra.gmra.mrb[20].mxu0 %vm324_vm1, %v1127_v41 }
 0x8a1   :  { %v1197_v42 = vpop.f32.mrb[20].mxu0 }
 0x8a2   :  { %1691 = vmatmul.mubr.f32.vlgmr.msra.gmra.mrb[20].mxu1 %v1197_v42  ;;  %v1657_v43 = vpop.f32.mrb[21].mxu0 }
 0x975   :  { %v1290_v45 = vpop.f32.mrb[20].mxu1 }
 0x976   :  { %v1291_v47 = vadd.f32 %v1402_v44, %v1290_v45  ;;  %v1692_v48 = vpop.f32.mrb[21].mxu1 }
 0x978   :  { %v1301_v49 = vadd.f32 %v1403_v46, %v1291_v47 }
 0x97a   :  { %v1303_v50 = vsel %vm1302_vm2, %v1301_v49, -inf }
 0x97b   :  { %1304 = vmax.xlane.f32.xlu0 %v1303_v50 }
 0xa08   :  { %v1305_v51 = vpop.xlane.xlu0 %1304 }
 0xa09   :  { %v1306_v52 = vsub.f32 %v1301_v49, %v1305_v51 }
 0xa0b   :  { %v1307_v53 = vmul.f32 1.442695, %v1306_v52 }
 0xa0d   :  { %1795 = vpow2.f32 %v1307_v53 }
 0xa17   :  { %v1796_v54 = vpop.eup %1795 }
 0xa18   :  { %v1309_v55 = vsel %vm1302_vm2, %v1796_v54, 0.0 }
 0xa19   :  { %1310 = vadd.xlane.f32.xlu0 %v1309_v55 }
 0xaa6   :  { %v1311_v56 = vpop.xlane.xlu0 %1310 }
 0xaa7   :  { %1797 = vlog2.f32 %v1311_v56 }
 0xab1   :  { %v1798_v31 = vpop.eup %1797 }
 0xab2   :  { %v1313_v57 = vmul.f32 0.6931472, %v1798_v31 }
 0xab4   :  { %v1314_v58 = vsub.f32 %v1306_v52, %v1313_v57 }
 0xab6   :  { %1315 = vst [vmem:[#allocation19] sm:$0x3] %v1314_v58 }
 0xab7   :  { %2030 = shalt.err (!%p2027_p0)
}
 0xab8   :  { %s2481_s21 = sld [smem:[#allocation31_spill]] }
 0xabe   :  { %s2031_s7 = scalar_lea.hbm %s2481_s21, 32 }
 0xabf   :  { %p2032_p1 = scmp.ne.s32.totalorder %s2481_s21, %s2031_s7  ;;  %p2035_p2 = scmp.lt.u32.totalorder %s2031_s7, %s2481_s21 }
 0xac1   :  { %p2037_p3 = pnand %p2035_p2, %p2032_p1 }
 0xac3   :  { %2040 = shalt.err (!%p2037_p3)
}
 0xac4   :  { %1325 = dma.vmem_to_hbm [thread:$0]  %s1323_s27, 32, %s2481_s21, [#allocation4]  }
 0xac5   :  { %2053 = dma.done.wait [#allocation4], 32  }
 0xac6   :  { %2054 = vsyncadd [#allocation4], 4294967264 }
 0xac7   :  { %1329 = vsyncpa [#allocation3], 1 }
 0xac8   :  { %1330 = vsyncpa [#allocation6], 1 }
 0xac9   :  { %1331 = vsyncpa [#allocation9], 1 }
 0xaca   :  { %1332 = vsyncpa [#allocation12], 1 }
 0xacb   :  { %1333 = vsyncpa [#allocation15], 1 }
 0xacc   :  { %1334 = vsyncpa [#allocation18], 1 }
 0xacd   :  { %1335 = vsyncpa [#allocation4], 1 }

</bundles_post_ra>
